<compile_context>
chip_gen: v5e
topology: v5e:2x2
jax: 0.10.0
libtpu: 0.0.40
codegen_flags: <defaults>
</compile_context>

<pallas_src>
import math

import jax
import jax.numpy as jnp
from jax import lax
from jax.experimental import pallas as pl
from jax.experimental.pallas import tpu as pltpu

K = 7          # conv kernel size
P = K // 2     # 'same' padding = 3


def _make_flat_band(weight, H, W, HWp):
    """Flat conv matrix (2*HWp, HWp), f32.

    band[c*HWp + r*W + s, i*W + j] = weight[0, c, r-i+P, s-j+P]
    (zero outside the 7x7 window / in HW->HWp padding), so that for the
    lane-dense flat maps   cat = [avg_flat | max_flat]  (B_tile, 2*HWp):
        conv = cat @ band                              (B_tile, HWp)
    reproduces the zero-padded 'same' 7x7 conv on the (H, W) image.
    """
    HW = H * W
    w2 = weight.reshape(2, K, K).astype(jnp.float32)
    r = jnp.arange(H)[:, None]
    i = jnp.arange(H)[None, :]
    dh = r - i + P                                            # (H, H)
    s = jnp.arange(W)[:, None]
    j = jnp.arange(W)[None, :]
    dw = s - j + P                                            # (W, W)
    ok_h = (dh >= 0) & (dh < K)
    ok_w = (dw >= 0) & (dw < K)
    band = w2[:, jnp.clip(dh, 0, K - 1)][:, :, :, jnp.clip(dw, 0, K - 1)]
    # band[c, r, i, s, j] = w2[c, r-i+P, s-j+P]
    mask = ok_h[None, :, :, None, None] & ok_w[None, None, None, :, :]
    band = jnp.where(mask, band, 0.0)
    band = band.transpose(0, 1, 3, 2, 4).reshape(2, HW, HW)   # rows=(r,s), cols=(i,j)
    band_p = jnp.zeros((2, HWp, HWp), jnp.float32).at[:, :HW, :HW].set(band)
    return band_p.reshape(2 * HWp, HWp)


def spatial_attention(x, weight, bias):
    """x: (B, C, H, W); weight: (1, 2, K, K) OIHW; bias: (1,)."""
    B, C, H, W = x.shape
    HW = H * W
    HWp = -(-HW // 128) * 128              # lane-dense pad (unmasked stores)
    itemsize = jnp.dtype(x.dtype).itemsize

    # ---- batch tile: BT images per grid step, (BT*C) % 8 == 0 --------------
    bt_unit = 8 // math.gcd(C, 8)          # smallest BT with BT*C % 8 == 0
    rows_budget = max(8, (1 << 20) // max(1, HWp * itemsize))   # ~1 MiB block
    n_units = -(-B // bt_unit)
    mult = max(1, min(rows_budget // max(C * bt_unit, 1), 8, n_units))
    if n_units >= 2:                       # keep >=2 grid steps for megacore
        mult = min(mult, max(1, n_units // 2))
    BT = bt_unit * mult
    B_pad = -(-B // BT) * BT
    grid = (B_pad // BT,)
    BTC = BT * C
    CH = min(8, C)                         # channel chunk (sublane-sized)
    inv_c = float(1.0 / C)

    # ---- wrapper-side layout: (B_pad*C, HWp) lane-dense -------------------
    x3 = x.reshape(B, C, HW)
    if HWp != HW or B_pad != B:
        x3 = jnp.pad(x3, ((0, B_pad - B), (0, 0), (0, HWp - HW)))
    x2 = x3.reshape(B_pad * C, HWp)

    # TODO(synk): flat-band conv assumes HW small enough that the (2*HWp,HWp)
    # matrix fits comfortably in VMEM (H, W <~ 64); larger images would need
    # the banded/tiled formulation instead.
    band = _make_flat_band(weight, H, W, HWp)                 # (2*HWp, HWp)
    b_flat = bias.reshape(1).astype(jnp.float32)

    def kernel(x_ref, band_ref, bias_ref, o_ref):
        # ---- per-image channel mean / max, streamed over C ----------------
        avg_rows, max_rows = [], []
        for b in range(BT):
            base = b * C
            s = None
            m = None
            for c0 in range(0, C, CH):
                cn = min(CH, C - c0)
                ck = x_ref[pl.ds(base + c0, cn), :].astype(jnp.float32)
                cs = jnp.sum(ck, axis=0, keepdims=True)        # (1, HWp) XLU
                cm = jnp.max(ck, axis=0, keepdims=True)
                s = cs if s is None else s + cs
                m = cm if m is None else jnp.maximum(m, cm)
            avg_rows.append(s * inv_c)
            max_rows.append(m)
        avg = avg_rows[0] if BT == 1 else jnp.concatenate(avg_rows, axis=0)
        mx = max_rows[0] if BT == 1 else jnp.concatenate(max_rows, axis=0)

        # ---- 7x7 conv(2->1): ONE fused lane-dense MXU matmul + bias -------
        cat = jnp.concatenate([avg, mx], axis=-1)              # (BT, 2*HWp)
        logits = jnp.dot(cat, band_ref[...],
                         preferred_element_type=jnp.float32)   # (BT, HWp)
        attn = jax.nn.sigmoid(logits + bias_ref[0])            # (BT, HWp) f32

        # ---- scale: out[b, c, :] = x[b, c, :] * attn[b, :] -----------------
        for b in range(BT):
            attn_b = jnp.broadcast_to(attn[b:b + 1, :],
                                      (CH, HWp)).astype(o_ref.dtype)  # hoisted
            base = b * C
            for c0 in range(0, C, CH):
                cn = min(CH, C - c0)
                xc = x_ref[pl.ds(base + c0, cn), :]
                o_ref[pl.ds(base + c0, cn), :] = xc * attn_b[:cn]

    # ---- generation-aware VMEM budget --------------------------------------
    x_block_bytes = BTC * HWp * itemsize
    band_bytes = 2 * HWp * HWp * 4
    need = 4 * x_block_bytes + 2 * band_bytes + (4 << 20)      # dbl-buffered
    try:
        cap = int(pltpu.get_tpu_info().vmem_capacity_bytes)
    except Exception:
        cap = 64 << 20                     # v7x per-TensorCore VMEM (smallest)
    usable = max(32 << 20, cap - (16 << 20))   # leave compiler-scratch headroom
    vmem_limit = int(min(max(32 << 20, need), usable))

    out2 = pl.pallas_call(
        kernel,
        out_shape=jax.ShapeDtypeStruct((B_pad * C, HWp), x.dtype),
        grid_spec=pltpu.PrefetchScalarGridSpec(
            num_scalar_prefetch=0,
            grid=grid,
            in_specs=[
                pl.BlockSpec((BTC, HWp), lambda i: (i, 0)),
                pl.BlockSpec((2 * HWp, HWp), lambda i: (0, 0)),
                pl.BlockSpec(memory_space=pltpu.MemorySpace.SMEM),
            ],
            out_specs=pl.BlockSpec((BTC, HWp), lambda i: (i, 0)),
        ),
        compiler_params=pltpu.CompilerParams(
            dimension_semantics=("parallel",),
            vmem_limit_bytes=vmem_limit,
        ),
    )(x2, band, b_flat)

    return out2.reshape(B_pad, C, HWp)[:B, :, :HW].reshape(B, C, H, W)


def reference(x, weight, bias):
    """Pure-JAX reference matching the PyTorch forward."""
    avg = jnp.mean(x, axis=1, keepdims=True)
    mx = jnp.max(x, axis=1, keepdims=True)
    cat = jnp.concatenate([avg, mx], axis=1)                   # (B, 2, H, W)
    conv = lax.conv_general_dilated(
        cat, weight, window_strides=(1, 1), padding=((P, P), (P, P)),
        dimension_numbers=("NCHW", "OIHW", "NCHW"),
        precision=lax.Precision.HIGHEST,
    ) + bias.reshape(1, 1, 1, 1)
    return x * jax.nn.sigmoid(conv)


if __name__ == "__main__":
    key = jax.random.PRNGKey(0)
    kx, kw, kb = jax.random.split(key, 3)

    B, C, H, W = 2, 4, 16, 16
    x = jax.random.normal(kx, (B, C, H, W), dtype=jnp.float32)

    # nn.Conv2d(2, 1, 7) parameter shapes; deterministic uniform init.
    fan_in = 2 * K * K
    bound = 1.0 / (fan_in ** 0.5)
    weight = jax.random.uniform(kw, (1, 2, K, K), jnp.float32, -bound, bound)
    bias = jax.random.uniform(kb, (1,), jnp.float32, -bound, bound)

    out = jax.block_until_ready(spatial_attention(x, weight, bias))
    ref = jax.block_until_ready(reference(x, weight, bias))

    assert out.shape == (B, C, H, W)
    err = float(jnp.max(jnp.abs(out - ref)))
    # The fused conv matmul runs at DEFAULT MXU precision (single bf16 pass)
    # per the perf review; worst-case deviation vs the HIGHEST-precision
    # reference is ~1e-3, so use a 5e-3 bound.
    assert err < 5e-3, f"mismatch vs reference: max abs err {err}"
    print("KERNEL_OK")
</pallas_src>

<mosaic_0001>
module attributes {stable_mosaic.version = 11 : i64} {
  func.func @kernel(%arg0: i32, %arg1: memref<8x256xf32, #tpu.memory_space<vmem>>, %arg2: memref<512x256xf32, #tpu.memory_space<vmem>>, %arg3: memref<1xf32, #tpu.memory_space<smem>>, %arg4: memref<8x256xf32, #tpu.memory_space<vmem>>) attributes {dimension_semantics = [#tpu.dimension_semantics<parallel>], iteration_bounds = array<i64: 1>, scalar_prefetch = 0 : i64, scratch_operands = 0 : i64, tpu.core_type = #tpu.core_type<tc>, window_params = [{transform_indices = @transform_0, window_bounds = array<i64: 8, 256>}, {pipeline_mode = #tpu.pipeline_mode<synchronous>, transform_indices = @transform_1, window_bounds = array<i64: 512, 256>}, {transform_indices = @transform_2, window_bounds = array<i64: 1>}, {transform_indices = @transform_3, window_bounds = array<i64: 8, 256>}]} {
    %c0 = arith.constant 0 : index
    %c0_0 = arith.constant 0 : index
    %0 = vector.load %arg1[%c0, %c0_0] : memref<8x256xf32, #tpu.memory_space<vmem>>, vector<4x256xf32>
    %cst = arith.constant dense<0.000000e+00> : vector<256xf32>
    %1 = vector.multi_reduction <add>, %0, %cst [0] : vector<4x256xf32> to vector<256xf32>
    %2 = vector.shape_cast %1 : vector<256xf32> to vector<1x256xf32>
    %cst_1 = arith.constant dense<0xFF800000> : vector<256xf32>
    %3 = vector.multi_reduction <maximumf>, %0, %cst_1 [0] : vector<4x256xf32> to vector<256xf32>
    %4 = vector.shape_cast %3 : vector<256xf32> to vector<1x256xf32>
    %cst_2 = arith.constant 2.500000e-01 : f32
    %5 = vector.broadcast %cst_2 : f32 to vector<1x256xf32>
    %6 = arith.mulf %2, %5 : vector<1x256xf32>
    %c4 = arith.constant 4 : index
    %c0_3 = arith.constant 0 : index
    %7 = vector.load %arg1[%c4, %c0_3] : memref<8x256xf32, #tpu.memory_space<vmem>>, vector<4x256xf32>
    %cst_4 = arith.constant dense<0.000000e+00> : vector<256xf32>
    %8 = vector.multi_reduction <add>, %7, %cst_4 [0] : vector<4x256xf32> to vector<256xf32>
    %9 = vector.shape_cast %8 : vector<256xf32> to vector<1x256xf32>
    %cst_5 = arith.constant dense<0xFF800000> : vector<256xf32>
    %10 = vector.multi_reduction <maximumf>, %7, %cst_5 [0] : vector<4x256xf32> to vector<256xf32>
    %11 = vector.shape_cast %10 : vector<256xf32> to vector<1x256xf32>
    %cst_6 = arith.constant 2.500000e-01 : f32
    %12 = vector.broadcast %cst_6 : f32 to vector<1x256xf32>
    %13 = arith.mulf %9, %12 : vector<1x256xf32>
    %14 = tpu.concatenate %6, %13 in 0 : vector<1x256xf32>, vector<1x256xf32> -> vector<2x256xf32>
    %15 = tpu.concatenate %4, %11 in 0 : vector<1x256xf32>, vector<1x256xf32> -> vector<2x256xf32>
    %16 = tpu.concatenate %14, %15 in 1 : vector<2x256xf32>, vector<2x256xf32> -> vector<2x512xf32>
    %c0_7 = arith.constant 0 : index
    %c0_8 = arith.constant 0 : index
    %17 = vector.load %arg2[%c0_7, %c0_8] : memref<512x256xf32, #tpu.memory_space<vmem>>, vector<512x256xf32>
    %cst_9 = arith.constant dense<0.000000e+00> : vector<2x256xf32>
    %18 = tpu.matmul %16, %17, %cst_9 {dimension_numbers = #tpu.dot_dimension_numbers<[1], [0], [0], [1], [0, 0, 1, 1], [], []>} : vector<2x512xf32>, vector<512x256xf32>, vector<2x256xf32> -> vector<2x256xf32>
    %c0_10 = arith.constant 0 : index
    %19 = memref.load %arg3[%c0_10] : memref<1xf32, #tpu.memory_space<smem>>
    %20 = vector.broadcast %19 : f32 to vector<2x256xf32>
    %21 = arith.addf %18, %20 : vector<2x256xf32>
    %22 = arith.negf %21 : vector<2x256xf32>
    %23 = math.exp %22 : vector<2x256xf32>
    %cst_11 = arith.constant 1.000000e+00 : f32
    %24 = vector.broadcast %cst_11 : f32 to vector<2x256xf32>
    %25 = arith.addf %24, %23 : vector<2x256xf32>
    %26 = arith.divf %24, %25 : vector<2x256xf32>
    %27 = vector.extract_strided_slice %26 {offsets = [0, 0], sizes = [1, 256], strides = [1, 1]} : vector<2x256xf32> to vector<1x256xf32>
    %28 = vector.shape_cast %27 : vector<1x256xf32> to vector<1x256xf32>
    %29 = vector.broadcast %28 : vector<1x256xf32> to vector<4x256xf32>
    %c0_12 = arith.constant 0 : index
    %c0_13 = arith.constant 0 : index
    %30 = vector.load %arg1[%c0_12, %c0_13] : memref<8x256xf32, #tpu.memory_space<vmem>>, vector<4x256xf32>
    %31 = arith.mulf %30, %29 : vector<4x256xf32>
    %c0_14 = arith.constant 0 : index
    %c0_15 = arith.constant 0 : index
    %32 = vector.load %arg4[%c0_14, %c0_15] : memref<8x256xf32, #tpu.memory_space<vmem>>, vector<4x256xf32>
    tpu.vector_store %arg4[%c0_14, %c0_15], %31 {strides = array<i32>} : memref<8x256xf32, #tpu.memory_space<vmem>>, vector<4x256xf32>,
    %33 = vector.extract_strided_slice %26 {offsets = [1, 0], sizes = [1, 256], strides = [1, 1]} : vector<2x256xf32> to vector<1x256xf32>
    %34 = vector.shape_cast %33 : vector<1x256xf32> to vector<1x256xf32>
    %35 = vector.broadcast %34 : vector<1x256xf32> to vector<4x256xf32>
    %c4_16 = arith.constant 4 : index
    %c0_17 = arith.constant 0 : index
    %36 = vector.load %arg1[%c4_16, %c0_17] : memref<8x256xf32, #tpu.memory_space<vmem>>, vector<4x256xf32>
    %37 = arith.mulf %36, %35 : vector<4x256xf32>
    %c4_18 = arith.constant 4 : index
    %c0_19 = arith.constant 0 : index
    %38 = vector.load %arg4[%c4_18, %c0_19] : memref<8x256xf32, #tpu.memory_space<vmem>>, vector<4x256xf32>
    tpu.vector_store %arg4[%c4_18, %c0_19], %37 {strides = array<i32>} : memref<8x256xf32, #tpu.memory_space<vmem>>, vector<4x256xf32>,
    return
  }
  func.func @transform_0(%arg0: i32) -> (i32, i32) {
    %c0_i32 = arith.constant 0 : i32
    %c0_i32_0 = arith.constant 0 : i32
    return %arg0, %c0_i32 : i32, i32
  }
  func.func @transform_1(%arg0: i32) -> (i32, i32) {
    %c0_i32 = arith.constant 0 : i32
    %c0_i32_0 = arith.constant 0 : i32
    %c0_i32_1 = arith.constant 0 : i32
    return %c0_i32, %c0_i32_0 : i32, i32
  }
  func.func @transform_2(%arg0: i32) -> i32 {
    %c0_i32 = arith.constant 0 : i32
    %c0_i32_0 = arith.constant 0 : i32
    return %c0_i32 : i32
  }
  func.func @transform_3(%arg0: i32) -> (i32, i32) {
    %c0_i32 = arith.constant 0 : i32
    %c0_i32_0 = arith.constant 0 : i32
    return %arg0, %c0_i32 : i32, i32
  }
}

</mosaic_0001>

<bundles_post_ra>
// kernel: tpu_custom_call.1
= control target key start
LH: loop header
LB: loop body
LE: loop exit
PB: predicated region body
PF: predicated region fallthrough
CT: control target
= control target key end

     0   :  { %9 = vsyncpa [#allocation4], 0  ;;  %s651_s0 = inlined_call_operand.hbm [shape: f32[8,256], index: 0, kind: input, shape index: {}]   ;;  %s652_s1 = inlined_call_operand.hbm [shape: f32[512,256], index: 1, kind: input, shape index: {}]   ;;  %s653_s2 = inlined_call_operand.<no memory space> [shape: f32[1], index: 2, kind: input, shape index: {}]   ;;  %s654_s3 = inlined_call_operand.hbm [shape: f32[8,256], index: 3, kind: output, shape index: {}]  }
   0x1   :  { %10 = vsyncpa [#allocation7], 0 }
   0x2   :  { %11 = vsyncpa [#allocation5], 0  ;;  %s17_s14 = sshll.u32 %s651_s0, 4  ;;  %s576_s15 = smov [#allocation3]   ;;  %s18_s14 = int_to_ptr.hbm [resolvable:$true] %s17_s14 }
   0x3   :  { %s19_s16 = sshll.u32 %s576_s15, 4  ;;  %s27_s19 = sshll.u32 %s652_s1, 4  ;;  %s20_s16 = int_to_ptr.vmem [resolvable:$true] %s19_s16  ;;  %s28_s19 = int_to_ptr.hbm [resolvable:$true] %s27_s19 }
   0x4   :  { %22 = dma.hbm_to_vmem [thread:$0]  %s18_s14, 256, %s20_s16, [#allocation4]  }
   0x5   :  { %s577_s20 = smov [#allocation6]   ;;  %s578_s22 = smov 256  }
   0x6   :  { %s29_s21 = sshll.u32 %s577_s20, 4  ;;  %s579_s23 = smov 16   ;;  %s30_s21 = int_to_ptr.vmem [resolvable:$true] %s29_s21 }
   0x7   :  { %35 = dma.hbm_to_vmem [thread:$0]  %s28_s19, 16384, %s30_s21, [#allocation7], %s578_s22, %s578_s22, %s579_s23  }
   0x8   :  { %570 = dma.done.wait [#allocation4], 256  }
   0x9   :  { %571 = vsyncadd [#allocation4], 4294967040 }
   0xa   :  { %572 = dma.done.wait [#allocation7], 16384  }
   0xb   :  { %573 = vsyncadd [#allocation7], 4294950912  ;;  %v217_v0 = vld [vmem:[#allocation6 + $0x2f0] sm:$0xff]  ;;  %v215_v2 = vld [vmem:[#allocation6 + $0x2e0] sm:$0xff]  ;;  %vm48_vm0 = vcmask 1043456   ;;  %vm101_vm1 = vcmask 1047556  }
   0xc   :  { %v153_v1 = vld [vmem:[#allocation6 + $0xf0] sm:$0xff]  ;;  %293 = vmatpush.msra.mxu2 %v217_v0  ;;  %v151_v4 = vld [vmem:[#allocation6 + $0xe0] sm:$0xff]  ;;  %vm118_vm2 = vcmask 1040384   ;;  %s472_s27 = sshll.u32 %s654_s3, 4  ;;  %s473_s27 = int_to_ptr.hbm [resolvable:$true] %s472_s27 }
   0xd   :  { %253 = vmatpush.msra.mxu0 %v153_v1  ;;  %v249_v3 = vld [vmem:[#allocation6 + $0x3f0] sm:$0xff]  ;;  %v247_v7 = vld [vmem:[#allocation6 + $0x3e0] sm:$0xff]  ;;  %v218_v1 = vld [vmem:[#allocation6 + $0x2f8] sm:$0xff] }
   0xe   :  { %v185_v5 = vld [vmem:[#allocation6 + $0x1f0] sm:$0xff]  ;;  %313 = vmatpush.msra.mxu3 %v249_v3  ;;  %294 = vmatpush.msra.mxu2 %v215_v2  ;;  %v183_v9 = vld [vmem:[#allocation6 + $0x1e0] sm:$0xff] }
   0xf   :  { %273 = vmatpush.msra.mxu1 %v185_v5  ;;  %v213_v6 = vld [vmem:[#allocation6 + $0x2d0] sm:$0xff]  ;;  %254 = vmatpush.msra.mxu0 %v151_v4  ;;  %v211_v11 = vld [vmem:[#allocation6 + $0x2c0] sm:$0xff] }
  0x10   :  { %v149_v8 = vld [vmem:[#allocation6 + $0xd0] sm:$0xff]  ;;  %314 = vmatpush.msra.mxu3 %v247_v7  ;;  %v147_v12 = vld [vmem:[#allocation6 + $0xc0] sm:$0xff]  ;;  %295 = vmatpush.msra.mxu2 %v213_v6 }
  0x11   :  { %v245_v10 = vld [vmem:[#allocation6 + $0x3d0] sm:$0xff]  ;;  %274 = vmatpush.msra.mxu1 %v183_v9  ;;  %255 = vmatpush.msra.mxu0 %v149_v8  ;;  %v243_v14 = vld [vmem:[#allocation6 + $0x3c0] sm:$0xff]  ;;  %v614_v9 = vld [vmem:[#allocation3 + $0x8] sm:$0xf] }
  0x12   :  { %v181_v13 = vld [vmem:[#allocation6 + $0x1d0] sm:$0xff]  ;;  %v179_v15 = vld [vmem:[#allocation6 + $0x1c0] sm:$0xff]  ;;  %315 = vmatpush.msra.mxu3 %v245_v10  ;;  %296 = vmatpush.msra.mxu2 %v211_v11  ;;  %v80_v10 = vld [vmem:[#allocation3 + $0x8] sm:$0xf0] }
  0x13   :  { %275 = vmatpush.msra.mxu1 %v181_v13  ;;  %v209_v16 = vld [vmem:[#allocation6 + $0x2b0] sm:$0xff]  ;;  %256 = vmatpush.msra.mxu0 %v147_v12  ;;  %v207_v20 = vld [vmem:[#allocation6 + $0x2a0] sm:$0xff]  ;;  %v154_v11 = vld [vmem:[#allocation6 + $0xf8] sm:$0xff] }
  0x14   :  { %v145_v17 = vld [vmem:[#allocation6 + $0xb0] sm:$0xff]  ;;  %316 = vmatpush.msra.mxu3 %v243_v14  ;;  %v143_v21 = vld [vmem:[#allocation6 + $0xa0] sm:$0xff]  ;;  %297 = vmatpush.msra.mxu2 %v209_v16  ;;  %v250_v12 = vld [vmem:[#allocation6 + $0x3f8] sm:$0xff]  ;;  %v70_v16 = vsel %vm48_vm0, %v614_v9, -inf }
  0x15   :  { %v241_v18 = vld [vmem:[#allocation6 + $0x3b0] sm:$0xff]  ;;  %276 = vmatpush.msra.mxu1 %v179_v15  ;;  %257 = vmatpush.msra.mxu0 %v145_v17  ;;  %v239_v22 = vld [vmem:[#allocation6 + $0x3a0] sm:$0xff]  ;;  %v216_v17 = vld [vmem:[#allocation6 + $0x2e8] sm:$0xff] }
  0x16   :  { %v177_v19 = vld [vmem:[#allocation6 + $0x1b0] sm:$0xff]  ;;  %v175_v23 = vld [vmem:[#allocation6 + $0x1a0] sm:$0xff]  ;;  %317 = vmatpush.msra.mxu3 %v241_v18  ;;  %298 = vmatpush.msra.mxu2 %v207_v20 }
  0x17   :  { %277 = vmatpush.msra.mxu1 %v177_v19  ;;  %v205_v24 = vld [vmem:[#allocation6 + $0x290] sm:$0xff]  ;;  %258 = vmatpush.msra.mxu0 %v143_v21  ;;  %v203_v28 = vld [vmem:[#allocation6 + $0x280] sm:$0xff]  ;;  %v71_v21 = vrot.slane %v70_v16, 4 }
  0x18   :  { %v141_v25 = vld [vmem:[#allocation6 + $0x90] sm:$0xff]  ;;  %318 = vmatpush.msra.mxu3 %v239_v22  ;;  %v139_v29 = vld [vmem:[#allocation6 + $0x80] sm:$0xff]  ;;  %299 = vmatpush.msra.mxu2 %v205_v24  ;;  %v84_v22 = vrot.slane %v80_v10, 4  ;;  %v186_v24 = vld [vmem:[#allocation6 + $0x1f8] sm:$0xff] }
  0x19   :  { %v237_v26 = vld [vmem:[#allocation6 + $0x390] sm:$0xff]  ;;  %278 = vmatpush.msra.mxu1 %v175_v23  ;;  %259 = vmatpush.msra.mxu0 %v141_v25  ;;  %v235_v30 = vld [vmem:[#allocation6 + $0x380] sm:$0xff]  ;;  %v152_v23 = vld [vmem:[#allocation6 + $0xe8] sm:$0xff] }
  0x1a   :  { %v173_v27 = vld [vmem:[#allocation6 + $0x190] sm:$0xff]  ;;  %v171_v31 = vld [vmem:[#allocation6 + $0x180] sm:$0xff]  ;;  %319 = vmatpush.msra.mxu3 %v237_v26  ;;  %300 = vmatpush.msra.mxu2 %v203_v28  ;;  %v56_v28 = vsel %vm48_vm0, %v614_v9, 0.0 }
  0x1b   :  { %279 = vmatpush.msra.mxu1 %v173_v27  ;;  %v201_v32 = vld [vmem:[#allocation6 + $0x270] sm:$0xff]  ;;  %260 = vmatpush.msra.mxu0 %v139_v29  ;;  %v199_v36 = vld [vmem:[#allocation6 + $0x260] sm:$0xff]  ;;  %v109_v27 = vsel %vm101_vm1, %v80_v10, -inf  ;;  %v214_v29 = vld [vmem:[#allocation6 + $0x2d8] sm:$0xff] }
  0x1c   :  { %v137_v33 = vld [vmem:[#allocation6 + $0x70] sm:$0xff]  ;;  %320 = vmatpush.msra.mxu3 %v235_v30  ;;  %v135_v37 = vld [vmem:[#allocation6 + $0x60] sm:$0xff]  ;;  %301 = vmatpush.msra.mxu2 %v201_v32  ;;  %v248_v30 = vld [vmem:[#allocation6 + $0x3e8] sm:$0xff] }
  0x1d   :  { %v233_v34 = vld [vmem:[#allocation6 + $0x370] sm:$0xff]  ;;  %280 = vmatpush.msra.mxu1 %v171_v31  ;;  %261 = vmatpush.msra.mxu0 %v137_v33  ;;  %v231_v38 = vld [vmem:[#allocation6 + $0x360] sm:$0xff]  ;;  %v72_v33 = vmax.f32 %v70_v16, %v71_v21  ;;  %v144_v10 = vld [vmem:[#allocation6 + $0xa8] sm:$0xff] }
  0x1e   :  { %v169_v35 = vld [vmem:[#allocation6 + $0x170] sm:$0xff]  ;;  %v167_v39 = vld [vmem:[#allocation6 + $0x160] sm:$0xff]  ;;  %321 = vmatpush.msra.mxu3 %v233_v34  ;;  %302 = vmatpush.msra.mxu2 %v199_v36  ;;  %v110_v34 = vrot.slane %v109_v27, 4  ;;  %v184_v36 = vld [vmem:[#allocation6 + $0x1e8] sm:$0xff] }
  0x1f   :  { %281 = vmatpush.msra.mxu1 %v169_v35  ;;  %v197_v40 = vld [vmem:[#allocation6 + $0x250] sm:$0xff]  ;;  %262 = vmatpush.msra.mxu0 %v135_v37  ;;  %v195_v44 = vld [vmem:[#allocation6 + $0x240] sm:$0xff]  ;;  %v150_v35 = vld [vmem:[#allocation6 + $0xd8] sm:$0xff] }
  0x20   :  { %v133_v41 = vld [vmem:[#allocation6 + $0x50] sm:$0xff]  ;;  %322 = vmatpush.msra.mxu3 %v231_v38  ;;  %v131_v45 = vld [vmem:[#allocation6 + $0x40] sm:$0xff]  ;;  %303 = vmatpush.msra.mxu2 %v197_v40  ;;  %v94_v40 = vsel %vm48_vm0, %v84_v22, 0.0  ;;  %v142_v22 = vld [vmem:[#allocation6 + $0x98] sm:$0xff] }
  0x21   :  { %v229_v42 = vld [vmem:[#allocation6 + $0x350] sm:$0xff]  ;;  %282 = vmatpush.msra.mxu1 %v167_v39  ;;  %263 = vmatpush.msra.mxu0 %v133_v41  ;;  %v227_v46 = vld [vmem:[#allocation6 + $0x340] sm:$0xff]  ;;  %v57_v39 = vrot.slane %v56_v28, 4  ;;  %v212_v41 = vld [vmem:[#allocation6 + $0x2c8] sm:$0xff] }
  0x22   :  { %v165_v43 = vld [vmem:[#allocation6 + $0x150] sm:$0xff]  ;;  %v163_v47 = vld [vmem:[#allocation6 + $0x140] sm:$0xff]  ;;  %323 = vmatpush.msra.mxu3 %v229_v42  ;;  %304 = vmatpush.msra.mxu2 %v195_v44  ;;  %v246_v42 = vld [vmem:[#allocation6 + $0x3d8] sm:$0xff] }
  0x23   :  { %283 = vmatpush.msra.mxu1 %v165_v43  ;;  %v193_v48 = vld [vmem:[#allocation6 + $0x230] sm:$0xff]  ;;  %264 = vmatpush.msra.mxu0 %v131_v45  ;;  %v191_v52 = vld [vmem:[#allocation6 + $0x220] sm:$0xff]  ;;  %v73_v45 = vrot.slane %v72_v33, 2 }
  0x24   :  { %v129_v49 = vld [vmem:[#allocation6 + $0x30] sm:$0xff]  ;;  %324 = vmatpush.msra.mxu3 %v227_v46  ;;  %v127_v53 = vld [vmem:[#allocation6 + $0x20] sm:$0xff]  ;;  %305 = vmatpush.msra.mxu2 %v193_v48  ;;  %v111_v46 = vmax.f32 %v109_v27, %v110_v34  ;;  %v182_v48 = vld [vmem:[#allocation6 + $0x1d8] sm:$0xff] }
  0x25   :  { %v225_v50 = vld [vmem:[#allocation6 + $0x330] sm:$0xff]  ;;  %284 = vmatpush.msra.mxu1 %v163_v47  ;;  %265 = vmatpush.msra.mxu0 %v129_v49  ;;  %v223_v55 = vld [vmem:[#allocation6 + $0x320] sm:$0xff]  ;;  %v148_v47 = vld [vmem:[#allocation6 + $0xc8] sm:$0xff] }
  0x26   :  { %v161_v51 = vld [vmem:[#allocation6 + $0x130] sm:$0xff]  ;;  %v159_v56 = vld [vmem:[#allocation6 + $0x120] sm:$0xff]  ;;  %325 = vmatpush.msra.mxu3 %v225_v50  ;;  %306 = vmatpush.msra.mxu2 %v191_v52  ;;  %v95_v52 = vrot.slane %v94_v40, 4  ;;  %v176_v27 = vld [vmem:[#allocation6 + $0x1a8] sm:$0xff] }
  0x27   :  { %v189_v54 = vld [vmem:[#allocation6 + $0x210] sm:$0xff]  ;;  %285 = vmatpush.msra.mxu1 %v161_v51  ;;  %v187_v58 = vld [vmem:[#allocation6 + $0x200] sm:$0xff]  ;;  %266 = vmatpush.msra.mxu0 %v127_v53  ;;  %v58_v51 = vadd.f32 %v57_v39, %v56_v28  ;;  %v210_v53 = vld [vmem:[#allocation6 + $0x2b8] sm:$0xff] }
  0x28   :  { %v125_v57 = vld [vmem:[#allocation6 + $0x10] sm:$0xff]  ;;  %326 = vmatpush.msra.mxu3 %v223_v55  ;;  %v123_v2 = vld [vmem:[#allocation6] sm:$0xff]  ;;  %307 = vmatpush.msra.mxu2 %v189_v54  ;;  %v244_v54 = vld [vmem:[#allocation6 + $0x3c8] sm:$0xff] }
  0x29   :  { %v607_v59 = vld [vmem:[#allocation3] sm:$0xf]  ;;  %v79_v63 = vld [vmem:[#allocation3] sm:$0xf0]  ;;  %286 = vmatpush.msra.mxu1 %v159_v56  ;;  %267 = vmatpush.msra.mxu0 %v125_v57  ;;  %v219_v7 = vld [vmem:[#allocation6 + $0x300] sm:$0xff]  ;;  %v74_v57 = vmax.f32 %v72_v33, %v73_v45 }
  0x2a   :  { %v221_v60 = vld [vmem:[#allocation6 + $0x310] sm:$0xff]  ;;  %v63_v62 = vsel %vm48_vm0, %v607_v59, -inf  ;;  %v49_v0 = vsel %vm48_vm0, %v607_v59, 0.0  ;;  %v83_v4 = vrot.slane %v79_v63, 4  ;;  %v102_v5 = vsel %vm101_vm1, %v79_v63, -inf  ;;  %308 = vmatpush.msra.mxu2 %v187_v58  ;;  %v155_v18 = vld [vmem:[#allocation6 + $0x100] sm:$0xff] }
  0x2b   :  { %v157_v61 = vld [vmem:[#allocation6 + $0x110] sm:$0xff]  ;;  %v64_v3 = vrot.slane %v63_v62, 4  ;;  %v50_v6 = vrot.slane %v49_v0, 4  ;;  %v103_v8 = vrot.slane %v102_v5, 4  ;;  %327 = vmatpush.msra.mxu3 %v221_v60  ;;  %268 = vmatpush.msra.mxu0 %v123_v2  ;;  %v112_v58 = vrot.slane %v111_v46, 2  ;;  %v204_v28 = vld [vmem:[#allocation6 + $0x288] sm:$0xff] }
  0x2c   :  { %287 = vmatpush.msra.mxu1 %v157_v61  ;;  %v87_v15 = vsel %vm48_vm0, %v83_v4, 0.0  ;;  %373 = vmatpush.msrb.mxu2 %v218_v1  ;;  %v146_v61 = vld [vmem:[#allocation6 + $0xb8] sm:$0xff]  ;;  %v96_v1 = vadd.f32 %v95_v52, %v94_v40  ;;  %v200_v40 = vld [vmem:[#allocation6 + $0x268] sm:$0xff] }
  0x2d   :  { %v65_v13 = vmax.f32 %v63_v62, %v64_v3  ;;  %v51_v14 = vadd.f32 %v50_v6, %v49_v0  ;;  %v104_v19 = vmax.f32 %v102_v5, %v103_v8  ;;  %v88_v20 = vrot.slane %v87_v15, 4  ;;  %328 = vmatpush.msra.mxu3 %v219_v7  ;;  %333 = vmatpush.msrb.mxu0 %v154_v11  ;;  %v180_v62 = vld [vmem:[#allocation6 + $0x1c8] sm:$0xff]  ;;  %v242_v3 = vld [vmem:[#allocation6 + $0x3b8] sm:$0xff] }
  0x2e   :  { %374 = vmatpush.msrb.mxu2 %v216_v17  ;;  %288 = vmatpush.msra.mxu1 %v155_v18  ;;  %v59_v0 = vrot.slane %v58_v51, 2  ;;  %v75_v5 = vrot.slane %v74_v57, 1  ;;  %v113_v6 = vmax.f32 %v111_v46, %v112_v58  ;;  %v208_v7 = vld [vmem:[#allocation6 + $0x2a8] sm:$0xff]  ;;  %v178_v17 = vld [vmem:[#allocation6 + $0x1b8] sm:$0xff] }
  0x2f   :  { %v66_v25 = vrot.slane %v65_v13, 2  ;;  %v52_v26 = vrot.slane %v51_v14, 2  ;;  %393 = vmatpush.msrb.mxu3 %v250_v12  ;;  %v105_v31 = vrot.slane %v104_v19, 2  ;;  %v89_v32 = vadd.f32 %v88_v20, %v87_v15  ;;  %334 = vmatpush.msrb.mxu0 %v152_v23  ;;  %v240_v18 = vld [vmem:[#allocation6 + $0x3a8] sm:$0xff]  ;;  %v198_v45 = vld [vmem:[#allocation6 + $0x258] sm:$0xff] }
  0x30   :  { %353 = vmatpush.msrb.mxu1 %v186_v24  ;;  %375 = vmatpush.msrb.mxu2 %v214_v29  ;;  %v60_v11 = vadd.f32 %v59_v0, %v58_v51  ;;  %v97_v12 = vrot.slane %v96_v1, 2  ;;  %v76_v15 = vmax.f32 %v74_v57, %v75_v5  ;;  %v114_v16 = vrot.slane %v113_v6, 1  ;;  %v170_v46 = vld [vmem:[#allocation6 + $0x178] sm:$0xff]  ;;  %v132_v52 = vld [vmem:[#allocation6 + $0x48] sm:$0xff] }
  0x31   :  { %v67_v37 = vmax.f32 %v65_v13, %v66_v25  ;;  %v53_v38 = vadd.f32 %v52_v26, %v51_v14  ;;  %v106_v43 = vmax.f32 %v104_v19, %v105_v31  ;;  %v90_v44 = vrot.slane %v89_v32, 2  ;;  %394 = vmatpush.msrb.mxu3 %v248_v30  ;;  %335 = vmatpush.msrb.mxu0 %v150_v35  ;;  %v206_v19 = vld [vmem:[#allocation6 + $0x298] sm:$0xff]  ;;  %v192_v57 = vld [vmem:[#allocation6 + $0x228] sm:$0xff] }
  0x32   :  { %354 = vmatpush.msrb.mxu1 %v184_v36  ;;  %376 = vmatpush.msrb.mxu2 %v212_v41  ;;  %v61_v20 = vrot.slane %v60_v11, 1  ;;  %v98_v21 = vadd.f32 %v97_v12, %v96_v1  ;;  %v115_v24 = vmax.f32 %v113_v6, %v114_v16  ;;  %v238_v31 = vld [vmem:[#allocation6 + $0x398] sm:$0xff]  ;;  %v172_v41 = vld [vmem:[#allocation6 + $0x188] sm:$0xff] }
  0x33   :  { %v68_v49 = vrot.slane %v67_v37, 1  ;;  %v54_v50 = vrot.slane %v53_v38, 1  ;;  %v107_v55 = vrot.slane %v106_v43, 1  ;;  %v91_v56 = vadd.f32 %v90_v44, %v89_v32  ;;  %395 = vmatpush.msrb.mxu3 %v246_v42  ;;  %336 = vmatpush.msrb.mxu0 %v148_v47  ;;  %v140_v32 = vld [vmem:[#allocation6 + $0x88] sm:$0xff]  ;;  %v174_v35 = vld [vmem:[#allocation6 + $0x198] sm:$0xff] }
  0x34   :  { %355 = vmatpush.msrb.mxu1 %v182_v48  ;;  %377 = vmatpush.msrb.mxu2 %v210_v53  ;;  %v62_v25 = vadd.f32 %v61_v20, %v60_v11  ;;  %v99_v26 = vrot.slane %v98_v21, 1  ;;  %v631_v30 = vsel %vm118_vm2, %v76_v15, %v115_v24  ;;  %v202_v36 = vld [vmem:[#allocation6 + $0x278] sm:$0xff]  ;;  %v136_v44 = vld [vmem:[#allocation6 + $0x68] sm:$0xff] }
  0x35   :  { %v69_v60 = vmax.f32 %v67_v37, %v68_v49  ;;  %v55_v63 = vadd.f32 %v54_v50, %v53_v38  ;;  %v108_v2 = vmax.f32 %v106_v43, %v107_v55  ;;  %v92_v4 = vrot.slane %v91_v56, 1  ;;  %396 = vmatpush.msrb.mxu3 %v244_v54  ;;  %337 = vmatpush.msrb.mxu0 %v146_v61  ;;  %v236_v37 = vld [vmem:[#allocation6 + $0x388] sm:$0xff]  ;;  %v138_v38 = vld [vmem:[#allocation6 + $0x78] sm:$0xff] }
  0x36   :  { %356 = vmatpush.msrb.mxu1 %v180_v62  ;;  %378 = vmatpush.msrb.mxu2 %v208_v7  ;;  %v78_v33 = vmul.f32 0.25, %v62_v25  ;;  %v100_v34 = vadd.f32 %v99_v26, %v98_v21  ;;  %v234_v42 = vld [vmem:[#allocation6 + $0x378] sm:$0xff]  ;;  %v232_v47 = vld [vmem:[#allocation6 + $0x368] sm:$0xff] }
  0x37   :  { %v77_v8 = vmul.f32 0.25, %v55_v63  ;;  %v624_v13 = vsel %vm118_vm2, %v69_v60, %v108_v2  ;;  %v93_v14 = vadd.f32 %v92_v4, %v91_v56  ;;  %397 = vmatpush.msrb.mxu3 %v242_v3  ;;  %338 = vmatpush.msrb.mxu0 %v144_v10  ;;  %v134_v48 = vld [vmem:[#allocation6 + $0x58] sm:$0xff]  ;;  %v196_v49 = vld [vmem:[#allocation6 + $0x248] sm:$0xff]  ;;  %v252_v10 = vstv %s653_s2  ;;  %s580_s2 = smov [#allocation8]  }
  0x38   :  { %309 = vmatmul.f32.vlgmr.msra.gmra.mxu2 %v624_v13  ;;  %357 = vmatpush.msrb.mxu1 %v178_v17  ;;  %v117_v39 = vmul.f32 0.25, %v100_v34  ;;  %v168_v50 = vld [vmem:[#allocation6 + $0x168] sm:$0xff]  ;;  %v230_v51 = vld [vmem:[#allocation6 + $0x358] sm:$0xff]  ;;  %s470_s24 = sshll.u32 %s580_s2, 4  ;;  %s471_s24 = int_to_ptr.vmem [resolvable:$true] %s470_s24 }
  0x39   :  { %v116_v23 = vmul.f32 0.25, %v93_v14  ;;  %398 = vmatpush.msrb.mxu3 %v240_v18  ;;  %379 = vmatpush.msrb.mxu2 %v206_v19  ;;  %v194_v53 = vld [vmem:[#allocation6 + $0x238] sm:$0xff]  ;;  %v228_v55 = vld [vmem:[#allocation6 + $0x348] sm:$0xff] }
  0x3a   :  { %339 = vmatpush.msrb.mxu0 %v142_v22  ;;  %329 = vmatmul.f32.vlgmr.msra.gmra.mxu3 %v631_v30  ;;  %v636_v43 = vsel %vm118_vm2, %v78_v33, %v117_v39  ;;  %v166_v54 = vld [vmem:[#allocation6 + $0x158] sm:$0xff]  ;;  %v164_v58 = vld [vmem:[#allocation6 + $0x148] sm:$0xff] }
  0x3b   :  { %v628_v29 = vsel %vm118_vm2, %v77_v8, %v116_v23  ;;  %358 = vmatpush.msrb.mxu1 %v176_v27  ;;  %380 = vmatpush.msrb.mxu2 %v204_v28  ;;  %v130_v56 = vld [vmem:[#allocation6 + $0x38] sm:$0xff]  ;;  %v128_v61 = vld [vmem:[#allocation6 + $0x28] sm:$0xff] }
  0x3c   :  { %269 = vmatmul.f32.vlgmr.msra.gmra.mxu0 %v628_v29  ;;  %399 = vmatpush.msrb.mxu3 %v238_v31  ;;  %v226_v60 = vld [vmem:[#allocation6 + $0x338] sm:$0xff]  ;;  %v224_v0 = vld [vmem:[#allocation6 + $0x328] sm:$0xff] }
  0x3d   :  { %340 = vmatpush.msrb.mxu0 %v140_v32  ;;  %359 = vmatpush.msrb.mxu1 %v174_v35  ;;  %v190_v62 = vld [vmem:[#allocation6 + $0x218] sm:$0xff]  ;;  %v188_v2 = vld [vmem:[#allocation6 + $0x208] sm:$0xff] }
  0x3e   :  { %381 = vmatpush.msrb.mxu2 %v202_v36  ;;  %400 = vmatpush.msrb.mxu3 %v236_v37  ;;  %v162_v63 = vld [vmem:[#allocation6 + $0x138] sm:$0xff]  ;;  %v160_v3 = vld [vmem:[#allocation6 + $0x128] sm:$0xff] }
  0x3f   :  { %341 = vmatpush.msrb.mxu0 %v138_v38  ;;  %289 = vmatmul.f32.vlgmr.msra.gmra.mxu1 %v636_v43  ;;  %v126_v1 = vld [vmem:[#allocation6 + $0x18] sm:$0xff]  ;;  %v124_v5 = vld [vmem:[#allocation6 + $0x8] sm:$0xff] }
  0x40   :  { %382 = vmatpush.msrb.mxu2 %v200_v40  ;;  %360 = vmatpush.msrb.mxu1 %v172_v41  ;;  %v222_v4 = vld [vmem:[#allocation6 + $0x318] sm:$0xff]  ;;  %v220_v7 = vld [vmem:[#allocation6 + $0x308] sm:$0xff] }
  0x41   :  { %401 = vmatpush.msrb.mxu3 %v234_v42  ;;  %342 = vmatpush.msrb.mxu0 %v136_v44  ;;  %v158_v6 = vld [vmem:[#allocation6 + $0x118] sm:$0xff]  ;;  %v156_v8 = vld [vmem:[#allocation6 + $0x108] sm:$0xff] }
  0x42   :  { %383 = vmatpush.msrb.mxu2 %v198_v45  ;;  %361 = vmatpush.msrb.mxu1 %v170_v46 }
  0x43   :  { %402 = vmatpush.msrb.mxu3 %v232_v47  ;;  %343 = vmatpush.msrb.mxu0 %v134_v48 }
  0x44   :  { %384 = vmatpush.msrb.mxu2 %v196_v49  ;;  %362 = vmatpush.msrb.mxu1 %v168_v50 }
  0x45   :  { %403 = vmatpush.msrb.mxu3 %v230_v51  ;;  %344 = vmatpush.msrb.mxu0 %v132_v52 }
  0x46   :  { %385 = vmatpush.msrb.mxu2 %v194_v53  ;;  %363 = vmatpush.msrb.mxu1 %v166_v54 }
  0x47   :  { %404 = vmatpush.msrb.mxu3 %v228_v55  ;;  %345 = vmatpush.msrb.mxu0 %v130_v56 }
  0x48   :  { %386 = vmatpush.msrb.mxu2 %v192_v57  ;;  %364 = vmatpush.msrb.mxu1 %v164_v58  ;;  %v460_v58 = vld [vmem:[#allocation3 + $0x8] sm:$0xf0] }
  0x49   :  { %405 = vmatpush.msrb.mxu3 %v226_v60  ;;  %346 = vmatpush.msrb.mxu0 %v128_v61 }
  0x4a   :  { %387 = vmatpush.msrb.mxu2 %v190_v62  ;;  %365 = vmatpush.msrb.mxu1 %v162_v63 }
  0x4b   :  { %406 = vmatpush.msrb.mxu3 %v224_v0  ;;  %347 = vmatpush.msrb.mxu0 %v126_v1 }
  0x4c   :  { %388 = vmatpush.msrb.mxu2 %v188_v2  ;;  %366 = vmatpush.msrb.mxu1 %v160_v3 }
  0x4d   :  { %407 = vmatpush.msrb.mxu3 %v222_v4  ;;  %389 = vmatmul.f32.vlgmr.msrb.gmra.mxu2 %v624_v13 }
  0x4e   :  { %348 = vmatpush.msrb.mxu0 %v124_v5  ;;  %367 = vmatpush.msrb.mxu1 %v158_v6 }
  0x4f   :  { %408 = vmatpush.msrb.mxu3 %v220_v7  ;;  %349 = vmatmul.f32.vlgmr.msrb.gmra.mxu0 %v628_v29 }
  0x50   :  { %409 = vmatmul.f32.vlgmr.msrb.gmra.mxu3 %v631_v30  ;;  %368 = vmatpush.msrb.mxu1 %v156_v8 }
  0x51   :  { %369 = vmatmul.f32.vlgmr.msrb.gmra.mxu1 %v636_v43  ;;  %v459_v43 = vld [vmem:[#allocation3] sm:$0xf0] }
  0xb9   :  { %v270_v11 = vpop.f32.mrf.mxu0 }
  0xba   :  { %v271_v12 = vadd.f32 %v270_v11, %v252_v10 }
  0xbb   :  { %v310_v15 = vpop.f32.mrf.mxu2 }
  0xbc   :  { %v290_v14 = vpop.f32.mrf.mxu1 }
  0xbd   :  { %v291_v13 = vadd.f32 %v290_v14, %v271_v12  ;;  %v330_v16 = vpop.f32.mrf.mxu3 }
  0xbf   :  { %v311_v17 = vadd.f32 %v310_v15, %v291_v13 }
  0xc1   :  { %v331_v18 = vadd.f32 %v330_v16, %v311_v17 }
  0xc3   :  { %v483_v19 = vmul.f32 -1.442695, %v331_v18 }
  0xc5   :  { %490 = vpow2.f32 %v483_v19 }
  0xcb   :  { %v491_v20 = vpop.eup %490 }
  0xcc   :  { %v419_v21 = vadd.f32 1.0, %v491_v20  ;;  %v350_v22 = vpop.f32.mrf.mxu0 }
  0xcd   :  { %v351_v23 = vadd.f32 %v350_v22, %v252_v10 }
  0xce   :  { %492 = vrcp.f32 %v419_v21  ;;  %v370_v24 = vpop.f32.mrf.mxu1  ;;  %vm426_vm3 = vweird.f32 %v419_v21  ;;  %v432_v33 = vand.u32 2147483648, %v419_v21  ;;  %v430_v35 = vand.u32 2147483647, %v419_v21 }
  0xcf   :  { %v371_v25 = vadd.f32 %v370_v24, %v351_v23 }
  0xd0   :  { %v390_v26 = vpop.f32.mrf.mxu2  ;;  %v433_v37 = vor.u32 1.1754944e-38, %v432_v33  ;;  %vm431_vm6 = vcmp.eq.f32.partialorder %v430_v35, 8.507059e+37 }
  0xd1   :  { %v391_v27 = vadd.f32 %v390_v26, %v371_v25 }
  0xd3   :  { %v410_v28 = vpop.f32.mrf.mxu3 }
  0xd4   :  { %v411_v29 = vadd.f32 %v410_v28, %v391_v27  ;;  %v493_v30 = vpop.eup %492 }
  0xd5   :  { %v422_v31 = vmul.f32 %v493_v30, %v419_v21  ;;  %vm427_vm4 = vweird.f32 %v493_v30 }
  0xd6   :  { %v484_v32 = vmul.f32 -1.442695, %v411_v29  ;;  %vm428_vm5 = vmor %vm426_vm3, %vm427_vm4 }
  0xd7   :  { %v423_v34 = vsub.f32 1.0, %v422_v31 }
  0xd8   :  { %494 = vpow2.f32 %v484_v32 }
  0xd9   :  { %v424_v36 = vmul.f32 %v493_v30, %v423_v34 }
  0xdb   :  { %v425_v38 = vadd.f32 %v493_v30, %v424_v36 }
  0xdd   :  { %v429_v40 = vsel %vm428_vm5, %v493_v30, %v425_v38 }
  0xde   :  { %v495_v39 = vpop.eup %494  ;;  %v434_v42 = vsel %vm431_vm6, %v433_v37, %v429_v40 }
  0xdf   :  { %v420_v41 = vadd.f32 1.0, %v495_v39  ;;  %v451_v44 = vperm.slane %v434_v42, 0  ;;  %v457_v45 = vperm.slane %v434_v42, 1 }
  0xe1   :  { %496 = vrcp.f32 %v420_v41  ;;  %v453_v46 = vmul.f32 %v451_v44, %v607_v59  ;;  %v461_v47 = vmul.f32 %v459_v43, %v457_v45  ;;  %v447_v51 = vand.u32 2147483648, %v420_v41 }
  0xe2   :  { %v445_v53 = vand.u32 2147483647, %v420_v41  ;;  %vm441_vm8 = vweird.f32 %v420_v41 }
  0xe3   :  { %455 = vst [vmem:[#allocation8] sm:$0xf] %v453_v46  ;;  %v448_v55 = vor.u32 1.1754944e-38, %v447_v51 }
  0xe4   :  { %463 = vst [vmem:[#allocation8] sm:$0xf0] %v461_v47  ;;  %vm446_vm10 = vcmp.eq.f32.partialorder %v445_v53, 8.507059e+37 }
  0xe7   :  { %v497_v48 = vpop.eup %496 }
  0xe8   :  { %v437_v49 = vmul.f32 %v497_v48, %v420_v41  ;;  %vm442_vm7 = vweird.f32 %v497_v48 }
  0xe9   :  { %vm443_vm9 = vmor %vm441_vm8, %vm442_vm7 }
  0xea   :  { %v438_v50 = vsub.f32 1.0, %v437_v49 }
  0xec   :  { %v439_v52 = vmul.f32 %v497_v48, %v438_v50 }
  0xee   :  { %v440_v54 = vadd.f32 %v497_v48, %v439_v52 }
  0xf0   :  { %v444_v56 = vsel %vm443_vm9, %v497_v48, %v440_v54 }
  0xf1   :  { %v449_v57 = vsel %vm446_vm10, %v448_v55, %v444_v56 }
  0xf2   :  { %v452_v60 = vperm.slane %v449_v57, 0  ;;  %v458_v59 = vperm.slane %v449_v57, 1 }
  0xf4   :  { %v454_v61 = vmul.f32 %v452_v60, %v614_v9  ;;  %v462_v62 = vmul.f32 %v460_v58, %v458_v59 }
  0xf6   :  { %456 = vst [vmem:[#allocation8 + $0x8] sm:$0xf] %v454_v61 }
  0xf7   :  { %464 = vst [vmem:[#allocation8 + $0x8] sm:$0xf0] %v462_v62 }
  0xf8   :  { %475 = dma.vmem_to_hbm [thread:$0]  %s471_s24, 256, %s473_s27, [#allocation5]  }
  0xf9   :  { %574 = dma.done.wait [#allocation5], 256  }
  0xfa   :  { %575 = vsyncadd [#allocation5], 4294967040 }
  0xfb   :  { %480 = vsyncpa [#allocation4], 1 }
  0xfc   :  { %481 = vsyncpa [#allocation7], 1 }
  0xfd   :  { %482 = vsyncpa [#allocation5], 1 }

</bundles_post_ra>
